<compile_context>
chip_gen: v5e
topology: v5e:2x2
jax: 0.10.0
libtpu: 0.0.40
codegen_flags: <defaults>
</compile_context>

<pallas_src>
import jax
import jax.numpy as jnp
from jax.experimental import pallas as pl
from jax.experimental.pallas import tpu as pltpu


LANE = 128  # TPU lane width; every matmul dim is zero-padded to this.


# ----------------------------- Pallas kernel --------------------------------
def student_kernel(patches_ref, wconv_ref, bconv_ref, wfc_ref, bfc_ref, out_ref):
    # patches_ref: [1, NB*H*W, 128]  bf16  (im2col rows; K zero-padded 27->128)
    # wconv_ref  : [128, 128]        bf16  (K x Cf, both zero-padded to 128)
    # bconv_ref  : [1, 128]          f32   (Cf zero-padded to 128)
    # wfc_ref    : [128, 128]        bf16  (Cf x NC, both zero-padded to 128)
    # bfc_ref    : [1, 128]          f32   (NC zero-padded to 128)
    # out_ref    : [1, NB, 128]      f32   (logits; NC zero-padded to 128)
    patches = patches_ref[0]                                   # [M, 128]
    nb = out_ref.shape[1]
    hw = patches.shape[0] // nb

    # Conv as one lane-dense MXU matmul: bf16 operands, f32 accumulation.
    conv = jnp.dot(patches, wconv_ref[...],
                   preferred_element_type=jnp.float32)         # [M, 128]
    conv = jnp.maximum(conv + bconv_ref[...], 0.0)             # bias + ReLU (f32)

    # Global average pool per image; padded feature lanes stay exactly zero.
    pooled = jnp.sum(conv.reshape(nb, hw, LANE), axis=1) * (1.0 / hw)  # [NB,128]

    # Linear head (bf16 operands, f32 accumulation), once per grid step.
    logits = jnp.dot(pooled.astype(jnp.bfloat16), wfc_ref[...],
                     preferred_element_type=jnp.float32) + bfc_ref[...]
    out_ref[0] = logits


# ------------------------------- wrapper -------------------------------------
def student_forward(x_nchw, params):
    """Pallas-backed forward. x_nchw: [N, C_in, H, W] f32 -> [N, num_classes]."""
    w_conv, b_conv, w_fc, b_fc = params
    N, C, H, W = x_nchw.shape
    K, Cf = w_conv.shape
    NC = w_fc.shape[1]
    HW = H * W

    # >= 2 grid steps so v7x megacore can shard the grid; the extra step is
    # negligible on v5e/v6e (per-step overhead ~0.35 us).
    num_steps = 2 if N >= 2 else 1
    NB = -(-N // num_steps)                   # images per grid step
    N_pad = num_steps * NB

    # --- wrapper-side im2col (lane-dense LHS; ~27 KB/image of HBM traffic) ---
    # The v2 on-chip concat/reshape relayout cost more than the matmul itself,
    # so the patch gather now happens once in XLA and the kernel body is a
    # single clean MXU call.  K ordered (kh, kw)-major, C-minor (matches the
    # weight reshape in init_params).
    xp = jnp.transpose(jnp.pad(x_nchw, ((0, 0), (0, 0), (1, 1), (1, 1))),
                       (0, 2, 3, 1))                            # [N, Hp, Wp, C]
    slabs = [xp[:, di:di + H, dj:dj + W, :]
             for di in range(3) for dj in range(3)]
    patches = jnp.concatenate(slabs, axis=-1).reshape(N, HW, K)  # [N, HW, 27]
    patches = jnp.pad(patches, ((0, N_pad - N), (0, 0), (0, LANE - K)))
    patches = patches.astype(jnp.bfloat16).reshape(num_steps, NB * HW, LANE)

    # --- zero-padded, lane-dense weights (VMEM-resident across grid steps) ---
    w_conv_p = jnp.zeros((LANE, LANE), jnp.float32).at[:K, :Cf].set(w_conv)
    b_conv_p = jnp.zeros((1, LANE), jnp.float32).at[0, :Cf].set(b_conv)
    w_fc_p = jnp.zeros((LANE, LANE), jnp.float32).at[:Cf, :NC].set(w_fc)
    b_fc_p = jnp.zeros((1, LANE), jnp.float32).at[0, :NC].set(b_fc)

    # Right-sized VMEM limit: double-buffered I/O + resident weights + f32
    # intermediates + headroom (actual usage is well under 1 MiB at demo size).
    step_bytes = (2 * (NB * HW * LANE * 2)    # double-buffered patches (bf16)
                  + 2 * (NB * LANE * 4)       # double-buffered output (f32)
                  + 2 * (LANE * LANE * 2)     # resident conv/fc weights (bf16)
                  + NB * HW * LANE * 4)       # f32 conv intermediate
    vmem_limit = int(min(step_bytes * 2 + (4 << 20), 64 << 20))

    out3 = pl.pallas_call(
        student_kernel,
        out_shape=jax.ShapeDtypeStruct((num_steps, NB, LANE), jnp.float32),
        grid=(num_steps,),
        in_specs=[
            pl.BlockSpec((1, NB * HW, LANE), lambda s: (s, 0, 0)),
            # Weights / biases: constant index_map -> resident across the grid.
            pl.BlockSpec((LANE, LANE), lambda s: (0, 0)),
            pl.BlockSpec((1, LANE), lambda s: (0, 0)),
            pl.BlockSpec((LANE, LANE), lambda s: (0, 0)),
            pl.BlockSpec((1, LANE), lambda s: (0, 0)),
        ],
        out_specs=pl.BlockSpec((1, NB, LANE), lambda s: (s, 0, 0)),
        compiler_params=pltpu.CompilerParams(
            dimension_semantics=("parallel",),   # shards across v7x's 2 TCs
            vmem_limit_bytes=vmem_limit),
    )(patches, w_conv_p.astype(jnp.bfloat16), b_conv_p,
      w_fc_p.astype(jnp.bfloat16), b_fc_p)

    return out3.reshape(num_steps * NB, LANE)[:N, :NC]


def init_params(key, c_in=3, c_feat=32, num_classes=10, k=3):
    k1, k2, k3, k4 = jax.random.split(key, 4)
    K = c_in * k * k
    # Deterministic, kaiming-ish scaled weights (synthetic, no checkpoint load).
    w_conv_t = jax.random.normal(k1, (c_feat, c_in, k, k), jnp.float32) * (2.0 / K) ** 0.5
    b_conv = jax.random.normal(k2, (c_feat,), jnp.float32) * 0.01
    w_fc_t = jax.random.normal(k3, (num_classes, c_feat), jnp.float32) * (1.0 / c_feat) ** 0.5
    b_fc = jax.random.normal(k4, (num_classes,), jnp.float32) * 0.01
    # Kernel layout: conv weight [K, Cf] with K ordered (kh, kw)-major, C-minor
    # (matches the wrapper im2col slab order); fc weight [Cf, NC]
    # (torch Linear computes x @ W.T + b).
    w_conv = jnp.transpose(w_conv_t, (2, 3, 1, 0)).reshape(K, c_feat)
    w_fc = w_fc_t.T
    return (w_conv, b_conv, w_fc, b_fc)


# Pure-f32 JAX reference (same math, no Pallas).
def reference_forward(x_nchw, params):
    w_conv, b_conv, w_fc, b_fc = params
    N, C, H, W = x_nchw.shape
    xp = jnp.transpose(jnp.pad(x_nchw, ((0, 0), (0, 0), (1, 1), (1, 1))),
                       (0, 2, 3, 1))                            # [N, Hp, Wp, C]
    slabs = [xp[:, di:di + H, dj:dj + W, :] for di in range(3) for dj in range(3)]
    patches = jnp.concatenate(slabs, axis=-1).reshape(N, H * W, 9 * C)
    conv = jnp.maximum(jnp.einsum("nhk,kc->nhc", patches, w_conv)
                       + b_conv[None, None, :], 0.0)
    pooled = jnp.mean(conv, axis=1)
    return pooled @ w_fc + b_fc[None, :]


if __name__ == "__main__":
    key = jax.random.PRNGKey(0)
    kx, kp = jax.random.split(key)

    N, C_in, H, W = 2, 3, 16, 16
    num_classes = 10

    x = jax.random.normal(kx, (N, C_in, H, W), jnp.float32)   # NCHW input
    params = init_params(kp, c_in=C_in, c_feat=32, num_classes=num_classes)

    out = jax.block_until_ready(student_forward(x, params))
    ref = reference_forward(x, params)

    assert out.shape == (N, num_classes)
    # bf16 matmul operands (f32 accumulation) -> looser tolerance vs f32 ref.
    assert jnp.allclose(out, ref, atol=2e-2, rtol=2e-2), "mismatch vs reference"

    print("KERNEL_OK")
</pallas_src>

<mosaic_0001>
module attributes {stable_mosaic.version = 11 : i64} {
  func.func @student_kernel(%arg0: i32, %arg1: memref<1x256x128xbf16, #tpu.memory_space<vmem>>, %arg2: memref<128x128xbf16, #tpu.memory_space<vmem>>, %arg3: memref<1x128xf32, #tpu.memory_space<vmem>>, %arg4: memref<128x128xbf16, #tpu.memory_space<vmem>>, %arg5: memref<1x128xf32, #tpu.memory_space<vmem>>, %arg6: memref<1x1x128xf32, #tpu.memory_space<vmem>>) attributes {dimension_semantics = [#tpu.dimension_semantics<parallel>], iteration_bounds = array<i64: 2>, scalar_prefetch = 0 : i64, scratch_operands = 0 : i64, tpu.core_type = #tpu.core_type<tc>, window_params = [{transform_indices = @transform_0, window_bounds = array<i64: 1, 256, 128>}, {pipeline_mode = #tpu.pipeline_mode<synchronous>, transform_indices = @transform_1, window_bounds = array<i64: 128, 128>}, {pipeline_mode = #tpu.pipeline_mode<synchronous>, transform_indices = @transform_2, window_bounds = array<i64: 1, 128>}, {pipeline_mode = #tpu.pipeline_mode<synchronous>, transform_indices = @transform_3, window_bounds = array<i64: 128, 128>}, {pipeline_mode = #tpu.pipeline_mode<synchronous>, transform_indices = @transform_4, window_bounds = array<i64: 1, 128>}, {transform_indices = @transform_5, window_bounds = array<i64: 1, 1, 128>}]} {
    %c0 = arith.constant 0 : index
    %c0_0 = arith.constant 0 : index
    %c0_1 = arith.constant 0 : index
    %0 = vector.load %arg1[%c0, %c0_0, %c0_1] : memref<1x256x128xbf16, #tpu.memory_space<vmem>>, vector<1x256x128xbf16>
    %1 = vector.shape_cast %0 : vector<1x256x128xbf16> to vector<256x128xbf16>
    %c0_2 = arith.constant 0 : index
    %c0_3 = arith.constant 0 : index
    %2 = vector.load %arg2[%c0_2, %c0_3] : memref<128x128xbf16, #tpu.memory_space<vmem>>, vector<128x128xbf16>
    %cst = arith.constant dense<0.000000e+00> : vector<256x128xf32>
    %3 = tpu.matmul %1, %2, %cst {dimension_numbers = #tpu.dot_dimension_numbers<[1], [0], [0], [1], [0, 0, 1, 1], [], []>} : vector<256x128xbf16>, vector<128x128xbf16>, vector<256x128xf32> -> vector<256x128xf32>
    %c0_4 = arith.constant 0 : index
    %c0_5 = arith.constant 0 : index
    %4 = vector.load %arg3[%c0_4, %c0_5] : memref<1x128xf32, #tpu.memory_space<vmem>>, vector<1x128xf32>
    %5 = vector.broadcast %4 : vector<1x128xf32> to vector<256x128xf32>
    %6 = arith.addf %3, %5 : vector<256x128xf32>
    %cst_6 = arith.constant 0.000000e+00 : f32
    %7 = vector.broadcast %cst_6 : f32 to vector<256x128xf32>
    %8 = arith.maximumf %6, %7 : vector<256x128xf32>
    %9 = vector.shape_cast %8 : vector<256x128xf32> to vector<1x256x128xf32>
    %cst_7 = arith.constant dense<0.000000e+00> : vector<1x128xf32>
    %10 = vector.multi_reduction <add>, %9, %cst_7 [1] : vector<1x256x128xf32> to vector<1x128xf32>
    %cst_8 = arith.constant 3.906250e-03 : f32
    %11 = vector.broadcast %cst_8 : f32 to vector<1x128xf32>
    %12 = arith.mulf %10, %11 : vector<1x128xf32>
    %13 = arith.truncf %12 : vector<1x128xf32> to vector<1x128xbf16>
    %c0_9 = arith.constant 0 : index
    %c0_10 = arith.constant 0 : index
    %14 = vector.load %arg4[%c0_9, %c0_10] : memref<128x128xbf16, #tpu.memory_space<vmem>>, vector<128x128xbf16>
    %cst_11 = arith.constant dense<0.000000e+00> : vector<1x128xf32>
    %15 = tpu.matmul %13, %14, %cst_11 {dimension_numbers = #tpu.dot_dimension_numbers<[1], [0], [0], [1], [0, 0, 1, 1], [], []>} : vector<1x128xbf16>, vector<128x128xbf16>, vector<1x128xf32> -> vector<1x128xf32>
    %c0_12 = arith.constant 0 : index
    %c0_13 = arith.constant 0 : index
    %16 = vector.load %arg5[%c0_12, %c0_13] : memref<1x128xf32, #tpu.memory_space<vmem>>, vector<1x128xf32>
    %17 = arith.addf %15, %16 : vector<1x128xf32>
    %c0_14 = arith.constant 0 : index
    %c0_15 = arith.constant 0 : index
    %c0_16 = arith.constant 0 : index
    %18 = vector.load %arg6[%c0_14, %c0_15, %c0_16] : memref<1x1x128xf32, #tpu.memory_space<vmem>>, vector<1x1x128xf32>
    %19 = vector.shape_cast %18 : vector<1x1x128xf32> to vector<1x128xf32>
    %20 = vector.shape_cast %17 : vector<1x128xf32> to vector<1x1x128xf32>
    tpu.vector_store %arg6[%c0_14, %c0_15, %c0_16], %20 {strides = array<i32>} : memref<1x1x128xf32, #tpu.memory_space<vmem>>, vector<1x1x128xf32>,
    return
  }
  func.func @transform_0(%arg0: i32) -> (i32, i32, i32) {
    %c0_i32 = arith.constant 0 : i32
    %c0_i32_0 = arith.constant 0 : i32
    %c0_i32_1 = arith.constant 0 : i32
    return %arg0, %c0_i32, %c0_i32_0 : i32, i32, i32
  }
  func.func @transform_1(%arg0: i32) -> (i32, i32) {
    %c0_i32 = arith.constant 0 : i32
    %c0_i32_0 = arith.constant 0 : i32
    %c0_i32_1 = arith.constant 0 : i32
    return %c0_i32, %c0_i32_0 : i32, i32
  }
  func.func @transform_2(%arg0: i32) -> (i32, i32) {
    %c0_i32 = arith.constant 0 : i32
    %c0_i32_0 = arith.constant 0 : i32
    %c0_i32_1 = arith.constant 0 : i32
    return %c0_i32, %c0_i32_0 : i32, i32
  }
  func.func @transform_3(%arg0: i32) -> (i32, i32) {
    %c0_i32 = arith.constant 0 : i32
    %c0_i32_0 = arith.constant 0 : i32
    %c0_i32_1 = arith.constant 0 : i32
    return %c0_i32, %c0_i32_0 : i32, i32
  }
  func.func @transform_4(%arg0: i32) -> (i32, i32) {
    %c0_i32 = arith.constant 0 : i32
    %c0_i32_0 = arith.constant 0 : i32
    %c0_i32_1 = arith.constant 0 : i32
    return %c0_i32, %c0_i32_0 : i32, i32
  }
  func.func @transform_5(%arg0: i32) -> (i32, i32, i32) {
    %c0_i32 = arith.constant 0 : i32
    %c0_i32_0 = arith.constant 0 : i32
    %c0_i32_1 = arith.constant 0 : i32
    return %arg0, %c0_i32, %c0_i32_0 : i32, i32, i32
  }
}

</mosaic_0001>

<bundles_post_ra>
// kernel: tpu_custom_call.1
= control target key start
LH: loop header
LB: loop body
LE: loop exit
PB: predicated region body
PF: predicated region fallthrough
CT: control target
= control target key end

     0   :  { %10 = vsyncpa [#allocation3], 0  ;;  %s1508_s0 = inlined_call_operand.hbm [shape: bf16[2,256,128], index: 0, kind: input, shape index: {}]   ;;  %s1509_s1 = inlined_call_operand.hbm [shape: bf16[128,128], index: 1, kind: input, shape index: {}]   ;;  %s1510_s2 = inlined_call_operand.vmem [shape: f32[1,128], index: 2, kind: input, shape index: {}]   ;;  %s1511_s3 = inlined_call_operand.hbm [shape: bf16[128,128], index: 3, kind: input, shape index: {}]   ;;  %s1512_s4 = inlined_call_operand.vmem [shape: f32[1,128], index: 4, kind: input, shape index: {}]   ;;  %s1513_s5 = inlined_call_operand.hbm [shape: f32[2,1,128], index: 5, kind: output, shape index: {}]  }
   0x1   :  { %12 = vsyncpa [#allocation3 + $0x1], 0 }
   0x2   :  { %13 = vsyncpa [#allocation6], 0 }
   0x3   :  { %14 = vsyncpa [#allocation4], 0 }
   0x4   :  { %16 = vsyncpa [#allocation4 + $0x1], 0  ;;  %s1275_s18 = smov 0   ;;  %s1277_s19 = smov 0  }
   0x5   :  { %s1279_s20 = smov 0   ;;  %s1281_s21 = smov 0  }
   0x6 LB: > { %s1296_s22 = sadd.s32 4294967295, %s1239_s21   ;;  %s810_s23 = sadd.s32 4294967294, %s1239_s21   ;;  %s1239_s21 = sphi %s1281_s21, %s1525_s21   ;;  %s1235_s20 = sphi %s1279_s20, %s1524_s20   ;;  %s1231_s19 = sphi %s1277_s19, %s1523_s19   ;;  %s1227_s18 = sphi %s1275_s18, %s1522_s18  }
   0x7   : > { %p42_p0 = scmp.ne.s32.totalorder %s1231_s19, %s1227_s18  ;;  %p43_p1 = scmp.eq.s32.totalorder %s1296_s22, 0 }
   0x8   : > { %p150_p2 = scmp.eq.s32.totalorder %s1296_s22, 1  ;;  %p156_p3 = scmp.eq.s32.totalorder %s810_s23, 1 }
   0x9   : > { %p1305_p4 = por %p43_p1, %p42_p0  ;;  %p811_p5 = scmp.ge.s32.totalorder %s1239_s21, 1 }
   0xa   : > { %p1310_p6 = por %p156_p3, %p42_p0  ;;  %p163_p7 = scmp.lt.s32.totalorder %s1239_s21, 3 }
   0xb   : > { %s174_s28 = sshll.u32 %s1509_s1, 4  ;;  %s1241_s30 = smov [#allocation5]   ;;  %s175_s28 = int_to_ptr.hbm [resolvable:$true] %s174_s28 }
   0xc   : > { %p1318_p8 = pnand %p811_p5, %p163_p7  ;;  %s176_s6 = sshll.u32 %s1241_s30, 4  ;;  %s177_s6 = int_to_ptr.vmem [resolvable:$true] %s176_s6 }
   0xd   : > { %s191_s9 = sshll.u32 %s1511_s3, 4  ;;  %s1514_s10 = smov 64   ;;  %s192_s9 = int_to_ptr.hbm [resolvable:$true] %s191_s9 }
   0xe   : > { %p1021_p9 = pneg %p1318_p8  ;;  %s1243_s11 = smov 4  }
   0xf   : > { %s1244_s12 = smov [#allocation7]   ;;  %s1337_s14 = sadd.s32 1, %s1239_s21  }
  0x10   : > { %p1022_p10 = pnand %p1021_p9, %p43_p1  ;;  %s193_s13 = sshll.u32 %s1244_s12, 4  ;;  %s194_s13 = int_to_ptr.vmem [resolvable:$true] %s193_s13 }
  0x11   : > { %s29_s15 = sadd.s32 1, %s1235_s20  ;;  %s26_s16 = ssub.s32 %s1239_s21, %s1337_s14 }
  0x12   : > { %1024 = dma.hbm_to_vmem [thread:$0]  (!%p1022_p10), %s175_s28, 1024, %s177_s6, [#allocation6], %s1514_s10, %s1514_s10, %s1243_s11  }
  0x13   : > { %1027 = dma.hbm_to_vmem [thread:$0]  (!%p1022_p10), %s192_s9, 1024, %s194_s13, [#allocation6], %s1514_s10, %s1514_s10, %s1243_s11  }
  0x14   : > { %p36_p12 = scmp.ne.s32.totalorder %s1235_s20, %s1231_s19  ;;  %p27_p13 = scmp.eq.s32.totalorder %s26_s16, 0 }
  0x15   : > { %p37_p0 = scmp.eq.s32.totalorder %s1239_s21, 0  ;;  %p1038_p5 = scmp.lt.s32.totalorder %s1239_s21, 2 }
  0x16   : > { %p1347_p3 = por %p150_p2, %p36_p12  ;;  %s210_s26 = sand.u32 1, %s1235_s20  }
  0x17   : > { %s1353_s23 = scalar_select %p27_p13, %s1235_s20, %s29_s15  }
  0x18   : > { %p38_p7 = por %p37_p0, %p36_p12  ;;  %s815_s27 = sshll.u32 %s210_s26, 7 }
  0x19   : > { %s952_s28 = sshll.u32 %s1239_s21, 7  ;;  %s214_s8 = scalar_lea.vmem [#allocation2], %s815_s27 }
  0x1a   : > { %s219_s7 = scalar_lea.hbm %s1508_s0, %s952_s28  ;;  %s222_s9 = sshll.u32 %s214_s8, 4  ;;  %s223_s9 = int_to_ptr.vmem [resolvable:$true] %s222_s9 }
  0x1b   : > { %s220_s12 = sshll.u32 %s219_s7, 4  ;;  %p1360_p2 = pnand %p1038_p5, %p38_p7  ;;  %s221_s12 = int_to_ptr.hbm [resolvable:$true] %s220_s12 }
  0x1c   : > { %s211_s15 = scalar_lea.sflag [#allocation3], %s210_s26  ;;  %s1139_s16 = sshra.s32 %s221_s12, 4  ;;  %s1140_s16 = int_to_ptr.hbm [resolvable:$true] %s1139_s16 }
  0x1d   : > { %s1141_s10 = scalar_lea.hbm %s1140_s16, 128  ;;  %p1143_p10 = pneg %p1360_p2 }
  0x1e   : > { %p1142_p9 = scmp.ne.s32.totalorder %s1140_s16, %s1141_s10  ;;  %s1146_s30 = scalar_lea.hbm %s1508_s0, 256 }
  0x1f   : > { %p1147_p0 = scmp.lt.s32.totalorder %s1140_s16, %s1508_s0  ;;  %p1148_p5 = scmp.lt.s32.totalorder %s1146_s30, %s1141_s10 }
  0x20   : > { %p1144_p12 = pnand %p1143_p10, %p1142_p9 }
  0x21   : > { %p1149_p7 = por %p1148_p5, %p1147_p0 }
  0x22   : > { %p1145_p13 = pneg %p1144_p12 }
  0x24   : > { %p1150_p11 = pnand %p1149_p7, %p1145_p13 }
  0x26   : > { %1153 = shalt.err (!%p1150_p11)
}
  0x27   : > { %s1520_s26 = smov 64   ;;  %234 = sbr.rel (%p1318_p8) target bundleno = 465 (0x1d1), region = 40 }
  0x28   : > { %1031 = dma.hbm_to_vmem [thread:$0]  (!%p1360_p2), %s221_s12, 2048, %s223_s9, %s211_s15, %s1520_s26, %s1520_s26, %s1243_s11  }
  0x29   : > { %s1380_s8 = sand.u32 (!%p1318_p8), 1, %s1231_s19  }
  0x2a   : > { %s819_s16 = sshll.u32 (!%p1318_p8), %s1380_s8, 7  ;;  %s237_s10 = scalar_lea.sflag (!%p1318_p8), [#allocation3], %s1380_s8 }
  0x2b   : > { %s1384_s28 = scalar_lea.vmem (!%p1318_p8), [#allocation2], %s819_s16 }
  0x2c   : > { %1214 = dma.done.wait (%p1305_p4), %s237_s10, 2048  }
  0x2d   : > { %1216 = vsyncadd (%p1305_p4), %s237_s10, 4294965248 }
  0x2e   : > { %1218 = dma.done.wait (%p43_p1), [#allocation6], 2048  }
  0x2f   : > { %1220 = vsyncadd (%p43_p1), [#allocation6], 4294965248  ;;  %v976_v0 = vld [vmem:[#allocation5 + $0x38] sm:$0xff]  ;;  %v975_v1 = vld [vmem:[#allocation5 + $0x30] sm:$0xff]  ;;  %s721_s12 = scalar_lea.hbm %s1513_s5, %s1296_s22  ;;  %s276_s27 = scalar_lea.vmem [#allocation8], %s1380_s8 }
  0x30   : > { %473 = vmatpush.bf16.msra.mxu0 %v976_v0  ;;  %986 = vmatpush.bf16.msra.mxu2 %v976_v0  ;;  %v974_v2 = vld [vmem:[#allocation5 + $0x28] sm:$0xff]  ;;  %v973_v3 = vld [vmem:[#allocation5 + $0x20] sm:$0xff]  ;;  %v972_v4 = vld [vmem:[#allocation5 + $0x18] sm:$0xff]  ;;  %s723_s30 = sshll.u32 %s276_s27, 4  ;;  %s725_s6 = sshll.u32 %s721_s12, 4  ;;  %s724_s30 = int_to_ptr.vmem [resolvable:$true] %s723_s30  ;;  %s726_s6 = int_to_ptr.hbm [resolvable:$true] %s725_s6 }
  0x31   : > { %987 = vmatpush.bf16.msra.mxu3 %v976_v0  ;;  %985 = vmatpush.bf16.msra.mxu1 %v976_v0  ;;  %v971_v5 = vld [vmem:[#allocation5 + $0x10] sm:$0xff]  ;;  %v970_v6 = vld [vmem:[#allocation5 + $0x8] sm:$0xff]  ;;  %v969_v7 = vld [vmem:[#allocation5] sm:$0xff]  ;;  %s713_s7 = scalar_lea.sflag [#allocation4], %s1380_s8  ;;  %s1183_s26 = sshra.s32 %s726_s6, 4  ;;  %s1184_s26 = int_to_ptr.hbm [resolvable:$true] %s1183_s26 }
  0x32   : > { %v953_v8 = vld [vmem:[%s1384_s28] sm:$0xff]  ;;  %v959_v9 = vld [vmem:[%s1384_s28 + $0x30] sm:$0xff]  ;;  %v964_v10 = vld [vmem:[%s1384_s28 + $0x58] sm:$0xff]  ;;  %s1185_s16 = scalar_lea.hbm %s1184_s26, 1  ;;  %p1190_p11 = scmp.lt.s32.totalorder %s1184_s26, %s1513_s5 }
  0x33   : > { %v957_v11 = vld [vmem:[%s1384_s28 + $0x20] sm:$0xff]  ;;  %v954_v12 = vld [vmem:[%s1384_s28 + $0x8] sm:$0xff]  ;;  %v960_v13 = vld [vmem:[%s1384_s28 + $0x38] sm:$0xff]  ;;  %p1186_p1 = scmp.ne.s32.totalorder %s1184_s26, %s1185_s16 }
  0x34   : > { %474 = vmatpush.bf16.msra.mxu0 %v975_v1  ;;  %989 = vmatpush.bf16.msra.mxu2 %v975_v1  ;;  %v965_v14 = vld [vmem:[%s1384_s28 + $0x60] sm:$0xff]  ;;  %v958_v15 = vld [vmem:[%s1384_s28 + $0x28] sm:$0xff]  ;;  %v955_v16 = vld [vmem:[%s1384_s28 + $0x10] sm:$0xff] }
  0x35   : > { %990 = vmatpush.bf16.msra.mxu3 %v975_v1  ;;  %988 = vmatpush.bf16.msra.mxu1 %v975_v1  ;;  %v961_v17 = vld [vmem:[%s1384_s28 + $0x40] sm:$0xff]  ;;  %v966_v18 = vld [vmem:[%s1384_s28 + $0x68] sm:$0xff]  ;;  %v956_v19 = vld [vmem:[%s1384_s28 + $0x18] sm:$0xff]  ;;  %p1187_p4 = pnand %p1186_p1, %p1347_p3 }
  0x36   : > { %v962_v20 = vld [vmem:[%s1384_s28 + $0x48] sm:$0xff]  ;;  %v967_v21 = vld [vmem:[%s1384_s28 + $0x70] sm:$0xff]  ;;  %v968_v23 = vld [vmem:[%s1384_s28 + $0x78] sm:$0xff] }
  0x37   : > { %v963_v22 = vld [vmem:[%s1384_s28 + $0x50] sm:$0xff]  ;;  %v1423_v38 = vld [vmem:[%s1510_s2] ss:$0 sm:$0xff]  ;;  %p1188_p8 = pneg %p1187_p4  ;;  %s1189_s28 = scalar_lea.hbm %s1513_s5, 2 }
  0x38   : > { %475 = vmatpush.bf16.msra.mxu0 %v974_v2  ;;  %992 = vmatpush.bf16.msra.mxu2 %v974_v2  ;;  %p1191_p2 = scmp.lt.s32.totalorder %s1189_s28, %s1185_s16 }
  0x39   : > { %993 = vmatpush.bf16.msra.mxu3 %v974_v2  ;;  %991 = vmatpush.bf16.msra.mxu1 %v974_v2 }
  0x3a   : > { %p1192_p9 = por %p1191_p2, %p1190_p11 }
  0x3c   : > { %476 = vmatpush.bf16.msra.mxu0 %v973_v3  ;;  %995 = vmatpush.bf16.msra.mxu2 %v973_v3  ;;  %p1193_p10 = pnand %p1192_p9, %p1188_p8 }
  0x3d   : > { %996 = vmatpush.bf16.msra.mxu3 %v973_v3  ;;  %994 = vmatpush.bf16.msra.mxu1 %v973_v3 }
  0x40   : > { %477 = vmatpush.bf16.msra.mxu0 %v972_v4  ;;  %998 = vmatpush.bf16.msra.mxu2 %v972_v4 }
  0x41   : > { %999 = vmatpush.bf16.msra.mxu3 %v972_v4  ;;  %997 = vmatpush.bf16.msra.mxu1 %v972_v4 }
  0x44   : > { %478 = vmatpush.bf16.msra.mxu0 %v971_v5  ;;  %1001 = vmatpush.bf16.msra.mxu2 %v971_v5 }
  0x45   : > { %1002 = vmatpush.bf16.msra.mxu3 %v971_v5  ;;  %1000 = vmatpush.bf16.msra.mxu1 %v971_v5 }
  0x48   : > { %479 = vmatpush.bf16.msra.mxu0 %v970_v6  ;;  %1004 = vmatpush.bf16.msra.mxu2 %v970_v6 }
  0x49   : > { %1005 = vmatpush.bf16.msra.mxu3 %v970_v6  ;;  %1003 = vmatpush.bf16.msra.mxu1 %v970_v6 }
  0x4c   : > { %480 = vmatpush.bf16.msra.mxu0 %v969_v7  ;;  %1007 = vmatpush.bf16.msra.mxu2 %v969_v7 }
  0x4d   : > { %1008 = vmatpush.bf16.msra.mxu3 %v969_v7  ;;  %1006 = vmatpush.bf16.msra.mxu1 %v969_v7 }
  0x4f   : > { %481 = vmatmul.bf16.vlgmr.msra.gmra.mxu0 %v953_v8  ;;  %511 = vmatmul.bf16.vlgmr.msra.gmra.mxu2 %v959_v9 }
  0x50   : > { %536 = vmatmul.bf16.vlgmr.msra.gmra.mxu3 %v964_v10  ;;  %501 = vmatmul.bf16.vlgmr.msra.gmra.mxu1 %v957_v11 }
  0x5f   : > { %486 = vmatmul.bf16.gmra.mxu0 %v954_v12  ;;  %516 = vmatmul.bf16.gmra.mxu2 %v960_v13 }
  0x60   : > { %541 = vmatmul.bf16.gmra.mxu3 %v965_v14  ;;  %506 = vmatmul.bf16.gmra.mxu1 %v958_v15  ;;  %v984_v14 = vld [vmem:[#allocation7 + $0x38] sm:$0xff] }
  0x61   : > { %698 = vmatpush.bf16.msrb.mxu1 %v984_v14 }
  0x6f   : > { %491 = vmatmul.bf16.gmra.mxu0 %v955_v16  ;;  %521 = vmatmul.bf16.gmra.mxu2 %v961_v17 }
  0x70   : > { %546 = vmatmul.bf16.gmra.mxu3 %v966_v18 }
  0x7f   : > { %496 = vmatmul.bf16.gmra.mxu0 %v956_v19  ;;  %526 = vmatmul.bf16.gmra.mxu2 %v962_v20 }
  0x80   : > { %551 = vmatmul.bf16.gmra.mxu3 %v967_v21  ;;  %v983_v21 = vld [vmem:[#allocation7 + $0x30] sm:$0xff] }
  0x81   : > { %699 = vmatpush.bf16.msrb.mxu1 %v983_v21 }
  0x8f   : > { %531 = vmatmul.bf16.gmra.mxu2 %v963_v22 }
  0x90   : > { %556 = vmatmul.bf16.gmra.mxu3 %v968_v23 }
  0xcc   : > { %v482_v24 = vpop.f32.mrf.mxu0 }
  0xcd   : > { %v502_v33 = vpop.f32.mrf.mxu1  ;;  %v483_v43 = vadd.f32 %v1423_v38, %v482_v24 }
  0xce   : > { %v503_v2 = vadd.f32 %v1423_v38, %v502_v33 }
  0xcf   : > { %v562_v48 = vmax.f32 %v483_v43, 0.0 }
  0xd0   : > { %v570_v10 = vmax.f32 %v503_v2, 0.0 }
  0xd2   : > { %v512_v25 = vpop.f32.mrf.mxu2 }
  0xd3   : > { %v1410_v27 = vpop.f32.mrf.mxu3  ;;  %v513_v18 = vadd.f32 %v1423_v38, %v512_v25 }
  0xd4   : > { %v484_v26 = vpop.f32.mrf.mxu0 }
  0xd5   : > { %v504_v39 = vpop.f32.mrf.mxu1  ;;  %v485_v42 = vadd.f32 %v1423_v38, %v484_v26  ;;  %v574_v26 = vmax.f32 %v513_v18, 0.0 }
  0xd6   : > { %v505_v5 = vadd.f32 %v1423_v38, %v504_v39  ;;  %v982_v39 = vld [vmem:[#allocation7 + $0x28] sm:$0xff] }
  0xd7   : > { %v563_v45 = vmax.f32 %v485_v42, 0.0  ;;  %700 = vmatpush.bf16.msrb.mxu1 %v982_v39 }
  0xd8   : > { %v571_v15 = vmax.f32 %v505_v5, 0.0 }
  0xd9   : > { %v594_v52 = vadd.f32 %v563_v45, %v562_v48  ;;  %v981_v45 = vld [vmem:[#allocation7 + $0x20] sm:$0xff] }
  0xda   : > { %v514_v28 = vpop.f32.mrf.mxu2 }
  0xdb   : > { %v1412_v30 = vpop.f32.mrf.mxu3  ;;  %v515_v22 = vadd.f32 %v1423_v38, %v514_v28  ;;  %701 = vmatpush.bf16.msrb.mxu1 %v981_v45 }
  0xdc   : > { %v487_v29 = vpop.f32.mrf.mxu0 }
  0xdd   : > { %v488_v44 = vadd.f32 %v1423_v38, %v487_v29  ;;  %v507_v55 = vpop.f32.mrf.mxu1 }
  0xde   : > { %v508_v11 = vadd.f32 %v1423_v38, %v507_v55 }
  0xdf   : > { %v564_v49 = vmax.f32 %v488_v44, 0.0 }
  0xe0   : > { %v572_v19 = vmax.f32 %v508_v11, 0.0 }
  0xe1   : > { %v595_v57 = vadd.f32 %v594_v52, %v564_v49  ;;  %v980_v52 = vld [vmem:[#allocation7 + $0x18] sm:$0xff] }
  0xe2   : > { %v517_v31 = vpop.f32.mrf.mxu2  ;;  %702 = vmatpush.bf16.msrb.mxu1 %v980_v52 }
  0xe3   : > { %v1416_v35 = vpop.f32.mrf.mxu3  ;;  %v518_v29 = vadd.f32 %v1423_v38, %v517_v31 }
  0xe4   : > { %v489_v32 = vpop.f32.mrf.mxu0 }
  0xe5   : > { %v490_v46 = vadd.f32 %v1423_v38, %v489_v32  ;;  %v509_v8 = vpop.f32.mrf.mxu1  ;;  %v576_v43 = vmax.f32 %v518_v29, 0.0 }
  0xe6   : > { %v510_v17 = vadd.f32 %v1423_v38, %v509_v8  ;;  %v543_v8 = vadd.f32 %v1423_v38, %v1416_v35 }
  0xe7   : > { %v565_v53 = vmax.f32 %v490_v46, 0.0 }
  0xe8   : > { %v573_v23 = vmax.f32 %v510_v17, 0.0  ;;  %v586_v14 = vmax.f32 %v543_v8, 0.0 }
  0xe9   : > { %v596_v60 = vadd.f32 %v595_v57, %v565_v53 }
  0xea   : > { %v1414_v34 = vpop.f32.mrf.mxu2 }
  0xeb   : > { %v1425_v41 = vpop.f32.mrf.mxu3  ;;  %v520_v42 = vadd.f32 %v1423_v38, %v1414_v34 }
  0xec   : > { %v492_v36 = vpop.f32.mrf.mxu0 }
  0xed   : > { %v493_v50 = vadd.f32 %v1423_v38, %v492_v36  ;;  %v577_v46 = vmax.f32 %v520_v42, 0.0 }
  0xef   : > { %v566_v58 = vmax.f32 %v493_v50, 0.0 }
  0xf1   : > { %v597_v63 = vadd.f32 %v596_v60, %v566_v58  ;;  %v979_v60 = vld [vmem:[#allocation7 + $0x10] sm:$0xff] }
  0xf2   : > { %v1418_v37 = vpop.f32.mrf.mxu2  ;;  %703 = vmatpush.bf16.msrb.mxu1 %v979_v60 }
  0xf3   : > { %v1433_v56 = vpop.f32.mrf.mxu3  ;;  %v523_v28 = vadd.f32 %v1423_v38, %v1418_v37 }
  0xf4   : > { %v494_v40 = vpop.f32.mrf.mxu0 }
  0xf5   : > { %v495_v54 = vadd.f32 %v1423_v38, %v494_v40  ;;  %v575_v40 = vmax.f32 %v515_v22, 0.0  ;;  %v578_v49 = vmax.f32 %v523_v28, 0.0 }
  0xf7   : > { %v567_v61 = vmax.f32 %v495_v54, 0.0 }
  0xf9   : > { %v598_v3 = vadd.f32 %v597_v63, %v567_v61 }
  0xfa   : > { %v524_v47 = vpop.f32.mrf.mxu2 }
  0xfb   : > { %v1439_v9 = vpop.f32.mrf.mxu3  ;;  %v525_v48 = vadd.f32 %v1423_v38, %v524_v47 }
  0xfc   : > { %v497_v51 = vpop.f32.mrf.mxu0  ;;  %v550_v17 = vadd.f32 %v1423_v38, %v1439_v9 }
  0xfd   : > { %v498_v59 = vadd.f32 %v1423_v38, %v497_v51  ;;  %v579_v53 = vmax.f32 %v525_v48, 0.0 }
  0xfe   : > { %v589_v21 = vmax.f32 %v550_v17, 0.0 }
  0xff   : > { %v568_v0 = vmax.f32 %v498_v59, 0.0 }
 0x101   : > { %v599_v6 = vadd.f32 %v598_v3, %v568_v0  ;;  %v538_v0 = vadd.f32 %v1423_v38, %v1410_v27  ;;  %v540_v3 = vadd.f32 %v1423_v38, %v1412_v30  ;;  %v548_v30 = vadd.f32 %v1423_v38, %v1433_v56 }
 0x102   : > { %v527_v62 = vpop.f32.mrf.mxu2 }
 0x103   : > { %v552_v36 = vpop.f32.mrf.mxu3  ;;  %v528_v50 = vadd.f32 %v1423_v38, %v527_v62  ;;  %v978_v62 = vld [vmem:[#allocation7 + $0x8] sm:$0xff] }
 0x104   : > { %v499_v1 = vpop.f32.mrf.mxu0  ;;  %704 = vmatpush.bf16.msrb.mxu1 %v978_v62  ;;  %v553_v35 = vadd.f32 %v1423_v38, %v552_v36 }
 0x105   : > { %v500_v4 = vadd.f32 %v1423_v38, %v499_v1  ;;  %v580_v37 = vmax.f32 %v528_v50, 0.0 }
 0x107   : > { %v569_v7 = vmax.f32 %v500_v4, 0.0 }
 0x109   : > { %v600_v12 = vadd.f32 %v599_v6, %v569_v7  ;;  %v977_v6 = vld [vmem:[#allocation7] sm:$0xff]  ;;  %v584_v7 = vmax.f32 %v538_v0, 0.0 }
 0x10a   : > { %v529_v13 = vpop.f32.mrf.mxu2  ;;  %705 = vmatpush.bf16.msrb.mxu1 %v977_v6 }
 0x10b   : > { %v601_v16 = vadd.f32 %v600_v12, %v570_v10  ;;  %v530_v34 = vadd.f32 %v1423_v38, %v529_v13  ;;  %v554_v57 = vpop.f32.mrf.mxu3  ;;  %v585_v12 = vmax.f32 %v540_v3, 0.0  ;;  %v545_v13 = vadd.f32 %v1423_v38, %v1425_v41 }
 0x10c   : > { %v555_v22 = vadd.f32 %v1423_v38, %v554_v57 }
 0x10d   : > { %v602_v20 = vadd.f32 %v601_v16, %v571_v15  ;;  %v581_v47 = vmax.f32 %v530_v34, 0.0  ;;  %v587_v16 = vmax.f32 %v545_v13, 0.0 }
 0x10e   : > { %v591_v56 = vmax.f32 %v555_v22, 0.0 }
 0x10f   : > { %v603_v24 = vadd.f32 %v602_v20, %v572_v19  ;;  %v588_v19 = vmax.f32 %v548_v30, 0.0 }
 0x111   : > { %v604_v32 = vadd.f32 %v603_v24, %v573_v23  ;;  %v590_v24 = vmax.f32 %v553_v35, 0.0 }
 0x112   : > { %v532_v33 = vpop.f32.mrf.mxu2 }
 0x113   : > { %v605_v25 = vadd.f32 %v604_v32, %v574_v26  ;;  %v533_v59 = vadd.f32 %v1423_v38, %v532_v33  ;;  %v557_v11 = vpop.f32.mrf.mxu3 }
 0x114   : > { %v558_v29 = vadd.f32 %v1423_v38, %v557_v11 }
 0x115   : > { %v606_v44 = vadd.f32 %v605_v25, %v575_v40  ;;  %v582_v2 = vmax.f32 %v533_v59, 0.0 }
 0x116   : > { %v592_v39 = vmax.f32 %v558_v29, 0.0 }
 0x117   : > { %v607_v31 = vadd.f32 %v606_v44, %v576_v43 }
 0x119   : > { %v608_v51 = vadd.f32 %v607_v31, %v577_v46 }
 0x11a   : > { %v534_v55 = vpop.f32.mrf.mxu2 }
 0x11b   : > { %v609_v54 = vadd.f32 %v608_v51, %v578_v49  ;;  %v535_v63 = vadd.f32 %v1423_v38, %v534_v55  ;;  %v559_v23 = vpop.f32.mrf.mxu3 }
 0x11c   : > { %v560_v33 = vadd.f32 %v1423_v38, %v559_v23  ;;  %v649_v38 = vld [vmem:[%s1512_s4] sm:$0x1] }
 0x11d   : > { %v610_v58 = vadd.f32 %v609_v54, %v579_v53  ;;  %v583_v5 = vmax.f32 %v535_v63, 0.0 }
 0x11e   : > { %v593_v36 = vmax.f32 %v560_v33, 0.0 }
 0x11f   : > { %v611_v61 = vadd.f32 %v610_v58, %v580_v37 }
 0x121   : > { %v612_v1 = vadd.f32 %v611_v61, %v581_v47 }
 0x123   : > { %v613_v4 = vadd.f32 %v612_v1, %v582_v2 }
 0x125   : > { %v614_v10 = vadd.f32 %v613_v4, %v583_v5 }
 0x127   : > { %v615_v27 = vadd.f32 %v614_v10, %v584_v7 }
 0x129   : > { %v616_v15 = vadd.f32 %v615_v27, %v585_v12 }
 0x12b   : > { %v617_v18 = vadd.f32 %v616_v15, %v586_v14 }
 0x12d   : > { %v618_v20 = vadd.f32 %v617_v18, %v587_v16 }
 0x12f   : > { %v619_v41 = vadd.f32 %v618_v20, %v588_v19 }
 0x131   : > { %v620_v26 = vadd.f32 %v619_v41, %v589_v21 }
 0x133   : > { %v621_v32 = vadd.f32 %v620_v26, %v590_v24 }
 0x135   : > { %v622_v9 = vadd.f32 %v621_v32, %v591_v56 }
 0x137   : > { %v623_v40 = vadd.f32 %v622_v9, %v592_v39 }
 0x139   : > { %v624_v42 = vadd.f32 %v623_v40, %v593_v36 }
 0x13b   : > { %v625_v25 = vrot.slane %v624_v42, 4 }
 0x13d   : > { %v626_v43 = vadd.f32 %v625_v25, %v624_v42 }
 0x13f   : > { %v627_v28 = vrot.slane %v626_v43, 2 }
 0x141   : > { %v628_v44 = vadd.f32 %v627_v28, %v626_v43 }
 0x143   : > { %v629_v45 = vrot.slane %v628_v44, 1 }
 0x145   : > { %v630_v46 = vadd.f32 %v629_v45, %v628_v44 }
 0x147   : > { %v631_v48 = vmul.f32 0.00390625, %v630_v46 }
 0x149   : > { %v632_v31 = vpack.c.bf16 %v631_v48, %v631_v48 }
 0x14b   : > { %706 = vmatmul.bf16.vlgmr.msrb.gmra.mxu1 %v632_v31 }
 0x1c8   : > { %v707_v49 = vpop.f32.mrf.mxu1 }
 0x1c9   : > { %v708_v50 = vadd.f32 %v707_v49, %v649_v38 }
 0x1cb   : > { %711 = vst [vmem:[%s276_s27] sm:$0x1] %v708_v50 }
 0x1cc   : > { %1196 = shalt.err (!%p1193_p10)
}
 0x1cd   : > { %1019 = dma.vmem_to_hbm [thread:$0]  (%p1347_p3), %s724_s30, 16, %s726_s6, %s713_s7  }
 0x1d0   : > { %v709_v51 = vpop.f32.mrf.mxu1 }
 0x1d1 PF: > { %s737_s8 = sand.u32 1, %s1227_s18   ;;  %p1521_p12 = scmp.ge.s32.totalorder %s1239_s21, 2 }
 0x1d2   : > { %s738_s11 = scalar_lea.sflag [#allocation4], %s737_s8 }
 0x1d3   : > { %p1033_p13 = pnand %p1521_p12, %p1310_p6 }
 0x1d5   : > { %p1034_p0 = pneg %p1033_p13 }
 0x1d7   : > { %1222 = dma.done.wait (%p1034_p0), %s738_s11, 16  }
 0x1d8   : > { %1224 = vsyncadd (%p1034_p0), %s738_s11, 4294967280  ;;  %p19_p5 = scmp.ge.s32.totalorder %s1337_s14, 4   ;;  %s1522_s18 = smov %s1231_s19 }
 0x1d9   : > { %s1523_s19 = smov %s1235_s20  ;;  %s1524_s20 = smov %s1353_s23 }
 0x1da   : > { %s1525_s21 = smov %s1337_s14  ;;  %21 = sbr.rel (!%p19_p5) target bundleno = 6 (0x6), region = 93 }
 0x1df   :  { %743 = vsyncpa [#allocation3], 1 }
 0x1e0   :  { %745 = vsyncpa [#allocation3 + $0x1], 1 }
 0x1e1   :  { %746 = vsyncpa [#allocation6], 1 }
 0x1e2   :  { %747 = vsyncpa [#allocation4], 1 }
 0x1e3   :  { %749 = vsyncpa [#allocation4 + $0x1], 1 }

</bundles_post_ra>
